<compile_context>
chip_gen: v7x
topology: tpu7x:2x2x1
jax: 0.10.0
libtpu: 0.0.40
codegen_flags: <defaults>
</compile_context>

<pallas_src>
import functools
import numpy as np
import jax
import jax.numpy as jnp
from jax.experimental import pallas as pl
from jax.experimental.pallas import tpu as pltpu

_VMEM_LIMIT_BYTES = 48 * 1024 * 1024          # < v7x 64 MiB physical, > 32 MiB default
_RESIDENT_EMBED_BYTES = 4 * 1024 * 1024       # keep embeds VMEM-resident below this


def _round_up(x, m):
    return ((x + m - 1) // m) * m


def _default_max_hw_tile():
    """Bigger lane tiles on the 128 MiB-VMEM chips (v5e/v6e); v7x-safe default."""
    try:
        info = pltpu.get_tpu_info()
        vmem = getattr(info, "vmem_capacity_bytes", None)
        if vmem is not None and vmem >= (96 << 20):
            return 8192
    except Exception:
        pass
    return 4096


def _pick_hw_tiling(hw, max_tile):
    """Return (hw_tile, hw_pad): a lane-dense (multiple-of-128) tile and the
    padded HW it divides.  Never falls back to an unbounded full-HW block."""
    max_tile = max(128, (max_tile // 128) * 128)
    hw128 = _round_up(hw, 128)
    if hw128 <= max_tile:
        return hw128, hw128
    best = 128
    for cand in range(128, max_tile + 1, 128):
        if hw128 % cand == 0:
            best = cand
    if best >= max_tile // 2:
        return best, hw128
    return max_tile, _round_up(hw, max_tile)


# ---------------------------------------------------------------------------
# Kernel 1: 3-layer MLP (Linear -> ReLU -> Linear -> ReLU -> Linear)
#   x bf16 [tm, Din], weights bf16, biases f32, output bf16, f32 MXU accum.
# ---------------------------------------------------------------------------
def mlp_kernel(x_ref, w1_ref, b1_ref, w2_ref, b2_ref, w3_ref, b3_ref, o_ref):
    h = jnp.dot(x_ref[...], w1_ref[...], preferred_element_type=jnp.float32) + b1_ref[...]
    h = jnp.maximum(h, 0.0).astype(jnp.bfloat16)
    h = jnp.dot(h, w2_ref[...], preferred_element_type=jnp.float32) + b2_ref[...]
    h = jnp.maximum(h, 0.0).astype(jnp.bfloat16)
    o = jnp.dot(h, w3_ref[...], preferred_element_type=jnp.float32) + b3_ref[...]
    o_ref[...] = o.astype(o_ref.dtype)


def run_mlp(x, w1, b1, w2, b2, w3, b3, tm=256):
    n, din = x.shape
    dh = w1.shape[1]
    dout = w3.shape[1]
    tm = min(tm, _round_up(n, 8))             # whole padded N in 1-2 big steps
    n_pad = _round_up(n, tm)
    if n_pad != n:
        x = jnp.pad(x, ((0, n_pad - n), (0, 0)))

    def rep(shape):
        return pl.BlockSpec(shape, lambda i: (0,) * len(shape))

    out = pl.pallas_call(
        mlp_kernel,
        out_shape=jax.ShapeDtypeStruct((n_pad, dout), jnp.bfloat16),
        grid=(n_pad // tm,),
        in_specs=[
            pl.BlockSpec((tm, din), lambda i: (i, 0)),
            rep((din, dh)), rep((1, dh)),
            rep((dh, dh)), rep((1, dh)),
            rep((dh, dout)), rep((1, dout)),
        ],
        out_specs=pl.BlockSpec((tm, dout), lambda i: (i, 0)),
        compiler_params=pltpu.CompilerParams(
            dimension_semantics=("parallel",),
            vmem_limit_bytes=_VMEM_LIMIT_BYTES),
    )(x, w1, b1, w2, b2, w3, b3)
    return out[:n]


# ---------------------------------------------------------------------------
# Kernel 2: selected-rows einsum.
#   embeds: [N_pad, C] bf16 (only selected (b,q,p) rows, grouped by batch,
#           each batch group padded to a multiple of tn)
#   feats : [B, C, HW_pad] bf16
#   tile_batch (scalar prefetch, SMEM): batch index of each row tile; the
#   feature index_map reads it so each row tile multiplies against the right
#   batch's feature slab.
# ---------------------------------------------------------------------------
def sel_einsum_resident_kernel(tb_ref, e_ref, f_ref, o_ref, *, tn):
    # Whole [N_pad, C] embeds live in VMEM; slice this tile's rows locally.
    del tb_ref                                 # consumed by the index maps only
    r0 = pl.multiple_of(pl.program_id(1) * tn, tn)
    e = e_ref[pl.ds(r0, tn), :]
    o_ref[...] = jnp.dot(e, f_ref[...], preferred_element_type=jnp.float32)


def sel_einsum_tiled_kernel(tb_ref, e_ref, f_ref, o_ref):
    del tb_ref
    o_ref[...] = jnp.dot(e_ref[...], f_ref[...], preferred_element_type=jnp.float32)


def run_selected_mask_einsum(tile_batch, embeds, feats, tn, hw_tile):
    n_pad, c = embeds.shape
    _, _, hw = feats.shape
    n_row_tiles = n_pad // tn
    n_hw_tiles = hw // hw_tile

    resident = n_pad * c * embeds.dtype.itemsize <= _RESIDENT_EMBED_BYTES
    if resident:
        kernel = functools.partial(sel_einsum_resident_kernel, tn=tn)
        e_spec = pl.BlockSpec((n_pad, c), lambda h, n, tb: (0, 0))
    else:
        kernel = sel_einsum_tiled_kernel
        e_spec = pl.BlockSpec((tn, c), lambda h, n, tb: (n, 0))

    grid_spec = pltpu.PrefetchScalarGridSpec(
        num_scalar_prefetch=1,
        grid=(n_hw_tiles, n_row_tiles),        # rows innermost -> feats DMA reuse
        in_specs=[
            e_spec,
            pl.BlockSpec((None, c, hw_tile), lambda h, n, tb: (tb[n], 0, h)),
        ],
        out_specs=pl.BlockSpec((tn, hw_tile), lambda h, n, tb: (n, h)),
    )
    return pl.pallas_call(
        kernel,
        out_shape=jax.ShapeDtypeStruct((n_pad, hw), jnp.float32),
        grid_spec=grid_spec,
        compiler_params=pltpu.CompilerParams(
            dimension_semantics=("parallel", "parallel"),
            vmem_limit_bytes=_VMEM_LIMIT_BYTES),
    )(tile_batch, embeds, feats)


# ---------------------------------------------------------------------------
# Host-side gather-index construction (ragged python lists, mirrors PyTorch).
# Rows are grouped by batch (the PyTorch ordering) and each batch group is
# padded to a multiple of `tn` so every row tile maps to a single batch.
# The total row-tile count is bucketed to a power of two to limit recompiles.
# ---------------------------------------------------------------------------
def _build_gather(num_parts_per_query, part_ids_per_query, Q, P, tn):
    gather_rows, tile_batch, out_positions = [], [], []
    for i, num_parts in enumerate(num_parts_per_query):
        if len(num_parts) == 0:
            continue
        rows_b = []
        for e, num_part in enumerate(num_parts):
            if part_ids_per_query is None:
                part_ids = range(int(num_part))
            else:
                part_ids = [int(v) for v in
                            np.asarray(part_ids_per_query[i][e]).reshape(-1)]
            for pid in part_ids:
                rows_b.append((i * Q + e) * P + pid)
        if not rows_b:
            continue
        start = len(gather_rows)
        out_positions.extend(range(start, start + len(rows_b)))
        gather_rows.extend(rows_b)
        pad = (-len(rows_b)) % tn
        gather_rows.extend([rows_b[0]] * pad)          # dummy rows, same batch
        tile_batch.extend([i] * ((len(rows_b) + pad) // tn))

    n_tiles = len(tile_batch)
    if n_tiles:
        bucketed = 1 << max(0, (n_tiles - 1).bit_length())
        gather_rows.extend([0] * ((bucketed - n_tiles) * tn))  # dummy rows, batch 0
        tile_batch.extend([0] * (bucketed - n_tiles))

    return (np.asarray(gather_rows, np.int32),
            np.asarray(tile_batch, np.int32),
            np.asarray(out_positions, np.int32))


# ---------------------------------------------------------------------------
# PartDecoder forward
# ---------------------------------------------------------------------------
def part_decoder_forward(queries, num_parts_per_query, mask_features, params,
                         num_part_classes, part_ids_per_query=None,
                         tn=128, max_hw_tile=None):
    B, Q, Din = queries.shape
    _, C, H, W = mask_features.shape          # C == mask_dim
    P = num_part_classes
    HW = H * W
    if max_hw_tile is None:
        max_hw_tile = _default_max_hw_tile()

    gather_rows, tile_batch, out_positions = _build_gather(
        num_parts_per_query, part_ids_per_query, Q, P, tn)
    if gather_rows.size == 0:
        return jnp.zeros((0, H, W), dtype=jnp.float32)

    # --- mask_head MLP (bf16 MXU inputs, f32 accumulation, lane-padded out) ---
    dout = P * C
    dout_pad = _round_up(dout, 128)
    w3, b3 = params["w3"], params["b3"]
    if dout_pad != dout:
        w3 = jnp.pad(w3, ((0, 0), (0, dout_pad - dout)))
        b3 = jnp.pad(b3, ((0, 0), (0, dout_pad - dout)))
    x = queries.reshape(B * Q, Din).astype(jnp.bfloat16)
    mlp_out = run_mlp(
        x,
        params["w1"].astype(jnp.bfloat16), params["b1"],
        params["w2"].astype(jnp.bfloat16), params["b2"],
        w3.astype(jnp.bfloat16), b3)                    # [B*Q, dout_pad] bf16
    mlp_out = mlp_out[:, :dout]                         # drop lane padding

    # tensor_split + stack + view == reshape; row (b*Q+q)*P + p holds embed (b,q,p)
    embeds_all = mlp_out.reshape(B * Q * P, C)

    # --- gather only the selected (b, q, p) embed rows (tiny JAX gather) ---
    gathered = embeds_all[jnp.asarray(gather_rows)]     # [N_pad, C] bf16

    # --- einsum over only the selected rows (scalar-prefetched batch index) ---
    hw_tile, hw_pad = _pick_hw_tiling(HW, max_hw_tile)
    feats_flat = mask_features.reshape(B, C, HW).astype(jnp.bfloat16)
    if hw_pad != HW:
        feats_flat = jnp.pad(feats_flat, ((0, 0), (0, 0), (0, hw_pad - HW)))
    out_flat = run_selected_mask_einsum(
        jnp.asarray(tile_batch), gathered, feats_flat, tn, hw_tile)  # [N_pad, hw_pad]

    out_flat = out_flat[jnp.asarray(out_positions)]
    if hw_pad != HW:
        out_flat = out_flat[:, :HW]
    return out_flat.reshape(-1, H, W)


# ---------------------------------------------------------------------------
# Pure-JAX reference (f32) for tolerance checking.
# ---------------------------------------------------------------------------
def _reference_forward(queries, num_parts_per_query, mask_features, params,
                       num_part_classes, part_ids_per_query=None):
    B, Q, Din = queries.shape
    _, C, H, W = mask_features.shape
    P = num_part_classes
    x = queries.reshape(B * Q, Din)
    h = jnp.maximum(x @ params["w1"] + params["b1"], 0.0)
    h = jnp.maximum(h @ params["w2"] + params["b2"], 0.0)
    emb = (h @ params["w3"] + params["b3"]).reshape(B, Q * P, C)
    out = jnp.einsum("bqc,bcl->bql", emb, mask_features.reshape(B, C, H * W))
    out = out.reshape(B, Q, P, H, W)
    ib, iq, ip = [], [], []
    for i, num_parts in enumerate(num_parts_per_query):
        if len(num_parts) == 0:
            continue
        for e, num_part in enumerate(num_parts):
            pids = (range(int(num_part)) if part_ids_per_query is None
                    else [int(v) for v in np.asarray(part_ids_per_query[i][e]).reshape(-1)])
            for pid in pids:
                ib.append(i); iq.append(e); ip.append(pid)
    if not ib:
        return jnp.zeros((0, H, W), jnp.float32)
    return out[jnp.asarray(ib), jnp.asarray(iq), jnp.asarray(ip)]


# ---------------------------------------------------------------------------
# Deterministic parameter init (shapes from PartDecoder.__init__)
# ---------------------------------------------------------------------------
def init_params(key, input_dim, hidden_dim, mask_dim, num_part_classes):
    out_dim = mask_dim * num_part_classes
    ks = jax.random.split(key, 6)
    scale = 0.05
    return {
        "w1": scale * jax.random.normal(ks[0], (input_dim, hidden_dim), jnp.float32),
        "b1": scale * jax.random.normal(ks[1], (1, hidden_dim), jnp.float32),
        "w2": scale * jax.random.normal(ks[2], (hidden_dim, hidden_dim), jnp.float32),
        "b2": scale * jax.random.normal(ks[3], (1, hidden_dim), jnp.float32),
        "w3": scale * jax.random.normal(ks[4], (hidden_dim, out_dim), jnp.float32),
        "b3": scale * jax.random.normal(ks[5], (1, out_dim), jnp.float32),
    }


if __name__ == "__main__":
    # Small, module-consistent shapes (real models: mask_dim/hidden >= 128).
    B, Q = 2, 8
    input_dim, hidden_dim = 32, 32
    mask_dim = 16
    num_part_classes = 4
    H = W = 16

    key = jax.random.PRNGKey(0)
    k_q, k_f, k_p = jax.random.split(key, 3)

    queries = jax.random.normal(k_q, (B, Q, input_dim), jnp.float32)
    mask_features = jax.random.normal(k_f, (B, mask_dim, H, W), jnp.float32)
    params = init_params(k_p, input_dim, hidden_dim, mask_dim, num_part_classes)

    # Ragged per-batch / per-query part counts (each <= num_part_classes).
    num_parts_per_query = [[2, 4, 1], [3]]

    out = part_decoder_forward(queries, num_parts_per_query, mask_features,
                               params, num_part_classes)
    out = jax.block_until_ready(out)

    expected_n = sum(sum(p) for p in num_parts_per_query)
    assert out.shape == (expected_n, H, W), out.shape
    assert bool(jnp.all(jnp.isfinite(out)))

    ref = _reference_forward(queries, num_parts_per_query, mask_features,
                             params, num_part_classes)
    np.testing.assert_allclose(np.asarray(out), np.asarray(ref),
                               rtol=5e-2, atol=1e-2)
    print("KERNEL_OK")
</pallas_src>

<mosaic_0001>
module attributes {stable_mosaic.version = 11 : i64} {
  func.func @mlp_kernel(%arg0: i32, %arg1: memref<16x32xbf16, #tpu.memory_space<vmem>>, %arg2: memref<32x32xbf16, #tpu.memory_space<vmem>>, %arg3: memref<1x32xf32, #tpu.memory_space<vmem>>, %arg4: memref<32x32xbf16, #tpu.memory_space<vmem>>, %arg5: memref<1x32xf32, #tpu.memory_space<vmem>>, %arg6: memref<32x128xbf16, #tpu.memory_space<vmem>>, %arg7: memref<1x128xf32, #tpu.memory_space<vmem>>, %arg8: memref<16x128xbf16, #tpu.memory_space<vmem>>) attributes {dimension_semantics = [#tpu.dimension_semantics<parallel>], iteration_bounds = array<i64: 1>, scalar_prefetch = 0 : i64, scratch_operands = 0 : i64, tpu.core_type = #tpu.core_type<tc>, window_params = [{transform_indices = @transform_0, window_bounds = array<i64: 16, 32>}, {pipeline_mode = #tpu.pipeline_mode<synchronous>, transform_indices = @transform_1, window_bounds = array<i64: 32, 32>}, {pipeline_mode = #tpu.pipeline_mode<synchronous>, transform_indices = @transform_2, window_bounds = array<i64: 1, 32>}, {pipeline_mode = #tpu.pipeline_mode<synchronous>, transform_indices = @transform_3, window_bounds = array<i64: 32, 32>}, {pipeline_mode = #tpu.pipeline_mode<synchronous>, transform_indices = @transform_4, window_bounds = array<i64: 1, 32>}, {pipeline_mode = #tpu.pipeline_mode<synchronous>, transform_indices = @transform_5, window_bounds = array<i64: 32, 128>}, {pipeline_mode = #tpu.pipeline_mode<synchronous>, transform_indices = @transform_6, window_bounds = array<i64: 1, 128>}, {transform_indices = @transform_7, window_bounds = array<i64: 16, 128>}]} {
    %c0 = arith.constant 0 : index
    %c0_0 = arith.constant 0 : index
    %0 = vector.load %arg1[%c0, %c0_0] : memref<16x32xbf16, #tpu.memory_space<vmem>>, vector<16x32xbf16>
    %c0_1 = arith.constant 0 : index
    %c0_2 = arith.constant 0 : index
    %1 = vector.load %arg2[%c0_1, %c0_2] : memref<32x32xbf16, #tpu.memory_space<vmem>>, vector<32x32xbf16>
    %cst = arith.constant dense<0.000000e+00> : vector<16x32xf32>
    %2 = tpu.matmul %0, %1, %cst {dimension_numbers = #tpu.dot_dimension_numbers<[1], [0], [0], [1], [0, 0, 1, 1], [], []>} : vector<16x32xbf16>, vector<32x32xbf16>, vector<16x32xf32> -> vector<16x32xf32>
    %c0_3 = arith.constant 0 : index
    %c0_4 = arith.constant 0 : index
    %3 = vector.load %arg3[%c0_3, %c0_4] : memref<1x32xf32, #tpu.memory_space<vmem>>, vector<1x32xf32>
    %4 = vector.broadcast %3 : vector<1x32xf32> to vector<16x32xf32>
    %5 = arith.addf %2, %4 : vector<16x32xf32>
    %cst_5 = arith.constant 0.000000e+00 : f32
    %6 = vector.broadcast %cst_5 : f32 to vector<16x32xf32>
    %7 = arith.maximumf %5, %6 : vector<16x32xf32>
    %8 = arith.truncf %7 : vector<16x32xf32> to vector<16x32xbf16>
    %c0_6 = arith.constant 0 : index
    %c0_7 = arith.constant 0 : index
    %9 = vector.load %arg4[%c0_6, %c0_7] : memref<32x32xbf16, #tpu.memory_space<vmem>>, vector<32x32xbf16>
    %cst_8 = arith.constant dense<0.000000e+00> : vector<16x32xf32>
    %10 = tpu.matmul %8, %9, %cst_8 {dimension_numbers = #tpu.dot_dimension_numbers<[1], [0], [0], [1], [0, 0, 1, 1], [], []>} : vector<16x32xbf16>, vector<32x32xbf16>, vector<16x32xf32> -> vector<16x32xf32>
    %c0_9 = arith.constant 0 : index
    %c0_10 = arith.constant 0 : index
    %11 = vector.load %arg5[%c0_9, %c0_10] : memref<1x32xf32, #tpu.memory_space<vmem>>, vector<1x32xf32>
    %12 = vector.broadcast %11 : vector<1x32xf32> to vector<16x32xf32>
    %13 = arith.addf %10, %12 : vector<16x32xf32>
    %cst_11 = arith.constant 0.000000e+00 : f32
    %14 = vector.broadcast %cst_11 : f32 to vector<16x32xf32>
    %15 = arith.maximumf %13, %14 : vector<16x32xf32>
    %16 = arith.truncf %15 : vector<16x32xf32> to vector<16x32xbf16>
    %c0_12 = arith.constant 0 : index
    %c0_13 = arith.constant 0 : index
    %17 = vector.load %arg6[%c0_12, %c0_13] : memref<32x128xbf16, #tpu.memory_space<vmem>>, vector<32x128xbf16>
    %cst_14 = arith.constant dense<0.000000e+00> : vector<16x128xf32>
    %18 = tpu.matmul %16, %17, %cst_14 {dimension_numbers = #tpu.dot_dimension_numbers<[1], [0], [0], [1], [0, 0, 1, 1], [], []>} : vector<16x32xbf16>, vector<32x128xbf16>, vector<16x128xf32> -> vector<16x128xf32>
    %c0_15 = arith.constant 0 : index
    %c0_16 = arith.constant 0 : index
    %19 = vector.load %arg7[%c0_15, %c0_16] : memref<1x128xf32, #tpu.memory_space<vmem>>, vector<1x128xf32>
    %20 = vector.broadcast %19 : vector<1x128xf32> to vector<16x128xf32>
    %21 = arith.addf %18, %20 : vector<16x128xf32>
    %22 = arith.truncf %21 : vector<16x128xf32> to vector<16x128xbf16>
    %c0_17 = arith.constant 0 : index
    %c0_18 = arith.constant 0 : index
    %23 = vector.load %arg8[%c0_17, %c0_18] : memref<16x128xbf16, #tpu.memory_space<vmem>>, vector<16x128xbf16>
    tpu.vector_store %arg8[%c0_17, %c0_18], %22 {strides = array<i32>} : memref<16x128xbf16, #tpu.memory_space<vmem>>, vector<16x128xbf16>,
    return
  }
  func.func @transform_0(%arg0: i32) -> (i32, i32) {
    %c0_i32 = arith.constant 0 : i32
    %c0_i32_0 = arith.constant 0 : i32
    return %arg0, %c0_i32 : i32, i32
  }
  func.func @transform_1(%arg0: i32) -> (i32, i32) {
    %c0_i32 = arith.constant 0 : i32
    %c0_i32_0 = arith.constant 0 : i32
    %c0_i32_1 = arith.constant 0 : i32
    return %c0_i32, %c0_i32_0 : i32, i32
  }
  func.func @transform_2(%arg0: i32) -> (i32, i32) {
    %c0_i32 = arith.constant 0 : i32
    %c0_i32_0 = arith.constant 0 : i32
    %c0_i32_1 = arith.constant 0 : i32
    return %c0_i32, %c0_i32_0 : i32, i32
  }
  func.func @transform_3(%arg0: i32) -> (i32, i32) {
    %c0_i32 = arith.constant 0 : i32
    %c0_i32_0 = arith.constant 0 : i32
    %c0_i32_1 = arith.constant 0 : i32
    return %c0_i32, %c0_i32_0 : i32, i32
  }
  func.func @transform_4(%arg0: i32) -> (i32, i32) {
    %c0_i32 = arith.constant 0 : i32
    %c0_i32_0 = arith.constant 0 : i32
    %c0_i32_1 = arith.constant 0 : i32
    return %c0_i32, %c0_i32_0 : i32, i32
  }
  func.func @transform_5(%arg0: i32) -> (i32, i32) {
    %c0_i32 = arith.constant 0 : i32
    %c0_i32_0 = arith.constant 0 : i32
    %c0_i32_1 = arith.constant 0 : i32
    return %c0_i32, %c0_i32_0 : i32, i32
  }
  func.func @transform_6(%arg0: i32) -> (i32, i32) {
    %c0_i32 = arith.constant 0 : i32
    %c0_i32_0 = arith.constant 0 : i32
    %c0_i32_1 = arith.constant 0 : i32
    return %c0_i32, %c0_i32_0 : i32, i32
  }
  func.func @transform_7(%arg0: i32) -> (i32, i32) {
    %c0_i32 = arith.constant 0 : i32
    %c0_i32_0 = arith.constant 0 : i32
    return %arg0, %c0_i32 : i32, i32
  }
}

</mosaic_0001>

<bundles_post_ra>
// kernel: tpu_custom_call.1
= control target key start
LH: loop header
LB: loop body
LE: loop exit
PB: predicated region body
PF: predicated region fallthrough
CT: control target
= control target key end

     0   :  { %12 = vsyncpa [#allocation3], 0  ;;  %s609_s0 = inlined_call_operand.hbm [shape: bf16[16,32], index: 0, kind: input, shape index: {}]   ;;  %s610_s1 = inlined_call_operand.hbm [shape: bf16[32,32], index: 1, kind: input, shape index: {}]   ;;  %s611_s2 = inlined_call_operand.vmem [shape: f32[1,32], index: 2, kind: input, shape index: {}]   ;;  %s612_s3 = inlined_call_operand.hbm [shape: bf16[32,32], index: 3, kind: input, shape index: {}]   ;;  %s613_s4 = inlined_call_operand.vmem [shape: f32[1,32], index: 4, kind: input, shape index: {}]   ;;  %s614_s5 = inlined_call_operand.vmem [shape: bf16[32,128], index: 5, kind: input, shape index: {}]   ;;  %s615_s6 = inlined_call_operand.vmem [shape: f32[1,128], index: 6, kind: input, shape index: {}]   ;;  %s616_s7 = inlined_call_operand.hbm [shape: bf16[16,128], index: 7, kind: output, shape index: {}]  }
   0x1   :  { %13 = vsyncpa [#allocation6], 0 }
   0x2   :  { %14 = vsyncpa [#allocation4], 0  ;;  %s476_s24 = smov [#allocation5]   ;;  %s477_s26 = smov [#allocation2]  }
   0x3   :  { %s32_s25 = sshll.u32 %s476_s24, 4  ;;  %s20_s27 = sshll.u32 %s477_s26, 4  ;;  %s33_s25 = int_to_ptr.vmem [resolvable:$true] %s32_s25  ;;  %s524_s27 = int_to_ptr.vmem [resolvable:$true] %s20_s27 }
   0x4   :  { %s382_s30 = scalar_lea.hbm %s610_s1, 256 }
   0x5   :  { %p383_p0 = scmp.ne.s32.totalorder %s610_s1, %s382_s30  ;;  %p386_p1 = scmp.lt.u32.totalorder %s382_s30, %s610_s1 }
   0x7   :  { %p388_p2 = pnand %p386_p1, %p383_p0 }
   0x9   :  { %391 = shalt.err (!%p388_p2)
}
   0xa   :  { %s392_s12 = scalar_lea.vmem %s33_s25, 256  ;;  %p397_p4 = scmp.lt.s32.totalorder %s33_s25, %s33_s25 }
   0xb   :  { %p393_p3 = scmp.ne.s32.totalorder %s33_s25, %s392_s12  ;;  %p398_p5 = scmp.lt.s32.totalorder %s392_s12, %s392_s12 }
   0xd   :  { %p399_p6 = por %p398_p5, %p397_p4 }
   0xf   :  { %p400_p7 = pnand %p399_p6, %p393_p3 }
  0x11   :  { %403 = shalt.err (!%p400_p7)
}
  0x12   :  { %s478_s13 = smov 64   ;;  %s479_s14 = smov 4  }
  0x13   :  { %38 = dma.hbm_to_vmem [thread:$0]  %s610_s1, 256, %s33_s25, [#allocation6], %s478_s13, %s478_s13, %s479_s14  }
  0x14   :  { %s404_s19 = scalar_lea.hbm %s609_s0, 128 }
  0x15   :  { %p405_p8 = scmp.ne.s32.totalorder %s609_s0, %s404_s19  ;;  %p408_p9 = scmp.lt.u32.totalorder %s404_s19, %s609_s0 }
  0x17   :  { %p410_p10 = pnand %p408_p9, %p405_p8 }
  0x19   :  { %413 = shalt.err (!%p410_p10)
}
  0x1a   :  { %s414_s24 = scalar_lea.vmem %s524_s27, 128  ;;  %p419_p12 = scmp.lt.s32.totalorder %s524_s27, %s524_s27 }
  0x1b   :  { %p415_p11 = scmp.ne.s32.totalorder %s524_s27, %s414_s24  ;;  %p420_p13 = scmp.lt.s32.totalorder %s414_s24, %s414_s24 }
  0x1d   :  { %p421_p0 = por %p420_p13, %p419_p12 }
  0x1f   :  { %p422_p1 = pnand %p421_p0, %p415_p11 }
  0x21   :  { %425 = shalt.err (!%p422_p1)
}
  0x22   :  { %26 = dma.hbm_to_vmem [thread:$0]  %s609_s0, 128, %s524_s27, [#allocation3], %s478_s13, %s478_s13, %s479_s14  }
  0x23   :  { %s480_s26 = smov [#allocation7]   ;;  %s426_s8 = scalar_lea.hbm %s612_s3, 256 }
  0x24   :  { %s46_s28 = sshll.u32 %s480_s26, 4  ;;  %p427_p2 = scmp.ne.s32.totalorder %s612_s3, %s426_s8  ;;  %s47_s28 = int_to_ptr.vmem [resolvable:$true] %s46_s28 }
  0x25   :  { %p430_p3 = scmp.lt.u32.totalorder %s426_s8, %s612_s3 }
  0x27   :  { %p432_p4 = pnand %p430_p3, %p427_p2 }
  0x29   :  { %435 = shalt.err (!%p432_p4)
}
  0x2a   :  { %s436_s15 = scalar_lea.vmem %s47_s28, 256  ;;  %p441_p6 = scmp.lt.s32.totalorder %s47_s28, %s47_s28 }
  0x2b   :  { %p437_p5 = scmp.ne.s32.totalorder %s47_s28, %s436_s15  ;;  %p442_p7 = scmp.lt.s32.totalorder %s436_s15, %s436_s15 }
  0x2d   :  { %p443_p8 = por %p442_p7, %p441_p6 }
  0x2f   :  { %p444_p9 = pnand %p443_p8, %p437_p5 }
  0x31   :  { %447 = shalt.err (!%p444_p9)
}
  0x32   :  { %52 = dma.hbm_to_vmem [thread:$0]  %s612_s3, 256, %s47_s28, [#allocation6], %s478_s13, %s478_s13, %s479_s14  }
  0x33   :  { %470 = dma.done.wait [#allocation3], 128  }
  0x34   :  { %471 = vsyncadd [#allocation3], 4294967168 }
  0x35   :  { %472 = dma.done.wait [#allocation6], 512  }
  0x36   :  { %473 = vsyncadd [#allocation6], 4294966784  ;;  %v481_v0 = vmov 0.0   ;;  %vm482_vm0 = vmmov 0   ;;  %v375_v1 = vld [vmem:[#allocation5] sm:$0xff]   ;;  %v376_v2 = vld [vmem:[#allocation5 + $0x8] sm:$0xff]  }
  0x37   :  { %343 = vmatprep.subr.bf16.mxu0 %v481_v0  ;;  %347 = vmatprep.mubr.msk.bf16.mxu0 %vm482_vm0, %v481_v0  ;;  %v377_v3 = vld [vmem:[#allocation2] sm:$0xff]   ;;  %vm99_vm1 = vcmask 261120   ;;  %v378_v4 = vld [vmem:[#allocation7] sm:$0xff]   ;;  %v312_v6 = vld [vmem:[%s611_s2] ss:$0 sm:$0xff] }
  0x38   :  { %351 = vmatprep.subr.bf16.mxu1 %v481_v0  ;;  %355 = vmatprep.mubr.msk.bf16.mxu1 %vm482_vm0, %v481_v0  ;;  %v379_v5 = vld [vmem:[#allocation7 + $0x8] sm:$0xff]   ;;  %v380_v16 = vld [vmem:[%s614_s5] sm:$0xff]   ;;  %v381_v17 = vld [vmem:[%s614_s5 + $0x8] sm:$0xff]   ;;  %s483_s5 = smov [#allocation8]  }
  0x39   :  { %344 = vmatpush3.bf16.msra.mxu0 %v375_v1  ;;  %352 = vmatpush3.bf16.msra.mxu1 %v378_v4  ;;  %v317_v18 = vld [vmem:[%s613_s4] ss:$0 sm:$0xff]  ;;  %s299_s4 = sshll.u32 %s483_s5, 4  ;;  %s300_s4 = int_to_ptr.vmem [resolvable:$true] %s299_s4 }
  0x3a   :  { %345 = vmatprep.subr.bf16.mxu0 %v481_v0  ;;  %353 = vmatprep.subr.bf16.mxu1 %v481_v0  ;;  %v321_v28 = vld [vmem:[%s615_s6] ss:$0 sm:$0xff]  ;;  %s448_s24 = scalar_lea.vmem %s300_s4, 128  ;;  %p453_p11 = scmp.lt.s32.totalorder %s300_s4, %s300_s4 }
  0x3b   :  { %p449_p10 = scmp.ne.s32.totalorder %s300_s4, %s448_s24  ;;  %p454_p12 = scmp.lt.s32.totalorder %s448_s24, %s448_s24 }
  0x3d   :  { %346 = vmatpush3.bf16.msra.mxu0 %v376_v2  ;;  %354 = vmatpush3.bf16.msra.mxu1 %v379_v5  ;;  %p455_p13 = por %p454_p12, %p453_p11 }
  0x3e   :  { %359 = vmatprep.subr.bf16.mxu0 %v481_v0 }
  0x3f   :  { %p456_p0 = pnand %p455_p13, %p449_p10 }
  0x40   :  { %348 = vmatmul.mubr.msk.bf16.vlgmr.msra.gmra.mrb[0].mxu0 %vm99_vm1, %v377_v3 }
  0x41   :  { %363 = vmatprep.mubr.msk.bf16.mxu0 %vm482_vm0, %v481_v0  ;;  %360 = vmatpush3.bf16.msra.mxu0 %v380_v16 }
  0x42   :  { %361 = vmatprep.subr.bf16.mxu0 %v481_v0 }
  0x45   :  { %362 = vmatpush3.bf16.msra.mxu0 %v381_v17 }
 0x113   :  { %v137_v7 = vpop.f32.mrb[0].mxu0 }
 0x114   :  { %v138_v8 = vadd.f32 %v312_v6, %v137_v7  ;;  %v349_v9 = vpop.f32.mrb[1].mxu0 }
 0x115   :  { %v140_v10 = vpop.f32.mrb[2].mxu0 }
 0x116   :  { %v141_v11 = vadd.f32 %v312_v6, %v140_v10  ;;  %v350_v12 = vpop.f32.mrb[3].mxu0  ;;  %v144_v13 = vmax.f32 %v138_v8, 0.0 }
 0x118   :  { %v145_v14 = vmax.f32 %v141_v11, 0.0 }
 0x11a   :  { %v146_v15 = vpack.c.bf16 %v145_v14, %v144_v13 }
 0x11c   :  { %356 = vmatmul.mubr.msk.bf16.vlgmr.msra.gmra.mrb[0].mxu1 %vm99_vm1, %v146_v15 }
 0x1ef   :  { %v207_v19 = vpop.f32.mrb[0].mxu1 }
 0x1f0   :  { %v208_v20 = vadd.f32 %v317_v18, %v207_v19  ;;  %v357_v21 = vpop.f32.mrb[1].mxu1 }
 0x1f1   :  { %v210_v22 = vpop.f32.mrb[2].mxu1 }
 0x1f2   :  { %v211_v23 = vadd.f32 %v317_v18, %v210_v22  ;;  %v358_v24 = vpop.f32.mrb[3].mxu1  ;;  %v214_v25 = vmax.f32 %v208_v20, 0.0 }
 0x1f4   :  { %v215_v26 = vmax.f32 %v211_v23, 0.0 }
 0x1f6   :  { %v216_v27 = vpack.c.bf16 %v215_v26, %v214_v25 }
 0x1f8   :  { %364 = vmatmul.mubr.msk.bf16.vlgmr.msra.gmra.mrb[4].mxu0 %vm99_vm1, %v216_v27 }
 0x2cb   :  { %v277_v29 = vpop.f32.mrb[4].mxu0 }
 0x2cc   :  { %v365_v30 = vpop.f32.mrb[5].mxu0  ;;  %v278_v32 = vadd.f32 %v321_v28, %v277_v29 }
 0x2cd   :  { %v280_v31 = vpop.f32.mrb[6].mxu0 }
 0x2ce   :  { %v281_v33 = vadd.f32 %v321_v28, %v280_v31  ;;  %v366_v34 = vpop.f32.mrb[7].mxu0 }
 0x2d0   :  { %v332_v35 = vpack.c.bf16 %v281_v33, %v278_v32 }
 0x2d2   :  { %333 = vst [vmem:[#allocation8] sm:$0xff] %v332_v35  }
 0x2d3   :  { %459 = shalt.err (!%p456_p0)
}
 0x2d4   :  { %s460_s25 = scalar_lea.hbm %s616_s7, 128 }
 0x2d5   :  { %p461_p1 = scmp.ne.s32.totalorder %s616_s7, %s460_s25  ;;  %p464_p2 = scmp.lt.u32.totalorder %s460_s25, %s616_s7 }
 0x2d7   :  { %p466_p3 = pnand %p464_p2, %p461_p1 }
 0x2d9   :  { %469 = shalt.err (!%p466_p3)
}
 0x2da   :  { %305 = dma.vmem_to_hbm [thread:$0]  %s300_s4, 128, %s616_s7, [#allocation4], %s478_s13, %s478_s13, %s479_s14  }
 0x2db   :  { %474 = dma.done.wait [#allocation4], 128  }
 0x2dc   :  { %475 = vsyncadd [#allocation4], 4294967168 }
 0x2dd   :  { %309 = vsyncpa [#allocation3], 1 }
 0x2de   :  { %310 = vsyncpa [#allocation6], 1 }
 0x2df   :  { %311 = vsyncpa [#allocation4], 1 }

</bundles_post_ra>
